<compile_context>
chip_gen: v5e
topology: v5e:2x2
jax: 0.10.0
libtpu: 0.0.40
codegen_flags: <defaults>
</compile_context>

<pallas_src>
import functools

import jax
import jax.numpy as jnp
from jax.experimental import pallas as pl
from jax.experimental.pallas import tpu as pltpu


def _round_up(n: int, m: int) -> int:
    return ((n + m - 1) // m) * m


# ---------------------------------------------------------------------------
# Kernel
# ---------------------------------------------------------------------------
def actor_critic_kernel(
    # inputs
    obs_ref, mem_ref,
    w_enc_ref, b_enc_ref,
    w_xg_ref, w_hg_ref, b_xg_ref, b_hg_ref,
    w_head_ref, b_head_ref,
    # outputs
    head_ref, new_mem_ref,
    *, hp: int,
):
    f32 = jnp.float32
    obs = obs_ref[...]
    mem = mem_ref[...]

    # Encoder: Linear + tanh (MXU + EUP).
    x = jnp.tanh(
        jnp.dot(obs, w_enc_ref[...], preferred_element_type=f32) + b_enc_ref[...]
    )

    # Fused GRU gates: one x-side GEMM and one mem-side GEMM, each (TB, 3*HP),
    # columns packed as [z | r | n].
    xg = jnp.dot(x, w_xg_ref[...], preferred_element_type=f32) + b_xg_ref[...]
    hg = jnp.dot(mem, w_hg_ref[...], preferred_element_type=f32) + b_hg_ref[...]

    z = jax.nn.sigmoid(xg[:, 0:hp] + hg[:, 0:hp])
    r = jax.nn.sigmoid(xg[:, hp:2 * hp] + hg[:, hp:2 * hp])
    n = jnp.tanh(xg[:, 2 * hp:3 * hp] + r * hg[:, 2 * hp:3 * hp])
    h_new = (1.0 - z) * n + z * mem
    new_mem_ref[...] = h_new

    # Fused actor/critic head: lane-dense (TB, HEADP) output = [mu | value | 0-pad].
    head_ref[...] = (
        jnp.dot(h_new, w_head_ref[...], preferred_element_type=f32) + b_head_ref[...]
    )


# ---------------------------------------------------------------------------
# Weight packing (fuse + pad to 128-lane multiples). Zero padding is exact:
# padded hidden units stay 0 through the GRU and feed zero head weights.
# ---------------------------------------------------------------------------
def pack_params(p):
    obs_dim, hidden = p["w_enc"].shape
    act_dim = p["w_mu"].shape[1]
    OP = _round_up(obs_dim, 128)
    HP = _round_up(hidden, 128)
    HEADP = _round_up(act_dim + 1, 128)

    def pad(a, rows, cols):
        a = a.astype(jnp.float32)
        return jnp.pad(a, ((0, rows - a.shape[0]), (0, cols - a.shape[1])))

    zeros_hp = jnp.zeros((1, HP), jnp.float32)
    w_head = jnp.concatenate([pad(p["w_mu"], HP, act_dim), pad(p["w_v"], HP, 1)], axis=1)
    b_head = jnp.concatenate([p["b_mu"], p["b_v"]], axis=1).astype(jnp.float32)

    return {
        "w_enc": pad(p["w_enc"], OP, HP),
        "b_enc": pad(p["b_enc"], 1, HP),
        # Fused GRU weights: columns [z | r | n], each HP wide.
        "w_xg": jnp.concatenate(
            [pad(p["w_xz"], HP, HP), pad(p["w_xr"], HP, HP), pad(p["w_xn"], HP, HP)],
            axis=1),
        "w_hg": jnp.concatenate(
            [pad(p["w_hz"], HP, HP), pad(p["w_hr"], HP, HP), pad(p["w_hn"], HP, HP)],
            axis=1),
        "b_xg": jnp.concatenate(
            [pad(p["b_z"], 1, HP), pad(p["b_r"], 1, HP), pad(p["b_n"], 1, HP)], axis=1),
        # mem-side bias: only b_hn lives on the candidate gate (inside the r*(...)).
        "b_hg": jnp.concatenate([zeros_hp, zeros_hp, pad(p["b_hn"], 1, HP)], axis=1),
        # Fused head: [w_mu | w_v | zero pad] -> lane-dense.
        "w_head": jnp.pad(w_head, ((0, 0), (0, HEADP - (act_dim + 1)))),
        "b_head": jnp.pad(b_head, ((0, 0), (0, HEADP - (act_dim + 1)))),
        "log_std": p["log_std"].astype(jnp.float32),
    }


# ---------------------------------------------------------------------------
# Wrapper
# ---------------------------------------------------------------------------
def actor_critic_forward(obs, mem, packed, *, batch_tile: int = 256):
    """obs: (B, obs_dim), mem: (B, hidden) -> (mu, std, value, new_mem)."""
    B, obs_dim = obs.shape
    hidden = mem.shape[1]
    act_dim = packed["log_std"].shape[1]

    OP = packed["w_enc"].shape[0]
    HP = packed["w_enc"].shape[1]
    HEADP = packed["w_head"].shape[1]

    B8 = _round_up(B, 8)
    TB = min(batch_tile, B8)
    B_pad = _round_up(B8, TB)

    obs_p = jnp.pad(obs.astype(jnp.float32), ((0, B_pad - B), (0, OP - obs_dim)))
    mem_p = jnp.pad(mem.astype(jnp.float32), ((0, B_pad - B), (0, HP - hidden)))

    row = lambda i: (i, 0)
    const = lambda i: (0, 0)

    head_out, new_mem_p = pl.pallas_call(
        functools.partial(actor_critic_kernel, hp=HP),
        out_shape=(
            jax.ShapeDtypeStruct((B_pad, HEADP), jnp.float32),  # [mu | value | pad]
            jax.ShapeDtypeStruct((B_pad, HP), jnp.float32),     # new memory
        ),
        grid=(pl.cdiv(B_pad, TB),),
        in_specs=[
            pl.BlockSpec((TB, OP), row),         # obs        (batch-blocked)
            pl.BlockSpec((TB, HP), row),         # mem        (batch-blocked)
            pl.BlockSpec((OP, HP), const),       # w_enc      (VMEM-resident)
            pl.BlockSpec((1, HP), const),        # b_enc
            pl.BlockSpec((HP, 3 * HP), const),   # w_xg (fused z|r|n)
            pl.BlockSpec((HP, 3 * HP), const),   # w_hg (fused z|r|n)
            pl.BlockSpec((1, 3 * HP), const),    # b_xg
            pl.BlockSpec((1, 3 * HP), const),    # b_hg
            pl.BlockSpec((HP, HEADP), const),    # w_head (fused mu|value)
            pl.BlockSpec((1, HEADP), const),     # b_head
        ],
        out_specs=(
            pl.BlockSpec((TB, HEADP), row),
            pl.BlockSpec((TB, HP), row),
        ),
        input_output_aliases={1: 1},             # reuse mem's HBM slab for new_mem
        compiler_params=pltpu.CompilerParams(
            dimension_semantics=("parallel",),   # v7x: shard batch grid over both TCs
        ),
    )(
        obs_p, mem_p,
        packed["w_enc"], packed["b_enc"],
        packed["w_xg"], packed["w_hg"], packed["b_xg"], packed["b_hg"],
        packed["w_head"], packed["b_head"],
    )

    mu = head_out[:B, :act_dim]
    val = head_out[:B, act_dim:act_dim + 1]
    new_mem = new_mem_p[:B, :hidden]
    # std is constant w.r.t. obs/mem -> computed in the wrapper, not stored by the kernel.
    std = jnp.broadcast_to(jnp.exp(packed["log_std"]), mu.shape)
    return mu, std, val, new_mem


# ---------------------------------------------------------------------------
# Parameter init + pure-JAX reference (correctness check)
# ---------------------------------------------------------------------------
def init_params(key, obs_dim, hidden, act_dim):
    ks = jax.random.split(key, 12)
    s = 0.1

    def w(k, shape):
        return (s * jax.random.normal(k, shape)).astype(jnp.float32)

    return {
        "w_enc": w(ks[0], (obs_dim, hidden)),
        "b_enc": jnp.zeros((1, hidden), jnp.float32),
        "w_xz": w(ks[1], (hidden, hidden)),
        "w_hz": w(ks[2], (hidden, hidden)),
        "b_z": jnp.zeros((1, hidden), jnp.float32),
        "w_xr": w(ks[3], (hidden, hidden)),
        "w_hr": w(ks[4], (hidden, hidden)),
        "b_r": jnp.zeros((1, hidden), jnp.float32),
        "w_xn": w(ks[5], (hidden, hidden)),
        "w_hn": w(ks[6], (hidden, hidden)),
        "b_hn": jnp.zeros((1, hidden), jnp.float32),
        "b_n": jnp.zeros((1, hidden), jnp.float32),
        "w_mu": w(ks[7], (hidden, act_dim)),
        "b_mu": jnp.zeros((1, act_dim), jnp.float32),
        "log_std": (-0.5 * jnp.ones((1, act_dim), jnp.float32)),
        "w_v": w(ks[8], (hidden, 1)),
        "b_v": jnp.zeros((1, 1), jnp.float32),
    }


def reference_forward(obs, mem, p):
    x = jnp.tanh(obs @ p["w_enc"] + p["b_enc"])
    z = jax.nn.sigmoid(x @ p["w_xz"] + mem @ p["w_hz"] + p["b_z"])
    r = jax.nn.sigmoid(x @ p["w_xr"] + mem @ p["w_hr"] + p["b_r"])
    n = jnp.tanh(x @ p["w_xn"] + r * (mem @ p["w_hn"] + p["b_hn"]) + p["b_n"])
    h = (1.0 - z) * n + z * mem
    mu = h @ p["w_mu"] + p["b_mu"]
    std = jnp.broadcast_to(jnp.exp(p["log_std"]), mu.shape)
    val = h @ p["w_v"] + p["b_v"]
    return mu, std, val, h


if __name__ == "__main__":
    key = jax.random.PRNGKey(0)
    k_obs, k_mem, k_par = jax.random.split(key, 3)

    B, OBS_DIM, HIDDEN, ACT_DIM = 8, 32, 32, 8

    obs = jax.random.normal(k_obs, (B, OBS_DIM), dtype=jnp.float32)
    mem = jax.random.normal(k_mem, (B, HIDDEN), dtype=jnp.float32)
    params = init_params(k_par, OBS_DIM, HIDDEN, ACT_DIM)
    packed = pack_params(params)

    fwd = jax.jit(actor_critic_forward)
    mu, std, val, new_mem = fwd(obs, mem, packed)
    jax.block_until_ready((mu, std, val, new_mem))

    mu_r, std_r, val_r, mem_r = reference_forward(obs, mem, params)
    assert jnp.allclose(mu, mu_r, atol=1e-4), float(jnp.max(jnp.abs(mu - mu_r)))
    assert jnp.allclose(std, std_r, atol=1e-4)
    assert jnp.allclose(val, val_r, atol=1e-4), float(jnp.max(jnp.abs(val - val_r)))
    assert jnp.allclose(new_mem, mem_r, atol=1e-4), float(jnp.max(jnp.abs(new_mem - mem_r)))

    print("KERNEL_OK")
</pallas_src>

<mosaic_0001>
module attributes {stable_mosaic.version = 11 : i64} {
  func.func @actor_critic_kernel(%arg0: i32, %arg1: memref<8x128xf32, #tpu.memory_space<vmem>>, %arg2: memref<8x128xf32, #tpu.memory_space<vmem>>, %arg3: memref<128x128xf32, #tpu.memory_space<vmem>>, %arg4: memref<1x128xf32, #tpu.memory_space<vmem>>, %arg5: memref<128x384xf32, #tpu.memory_space<vmem>>, %arg6: memref<128x384xf32, #tpu.memory_space<vmem>>, %arg7: memref<1x384xf32, #tpu.memory_space<vmem>>, %arg8: memref<1x384xf32, #tpu.memory_space<vmem>>, %arg9: memref<128x128xf32, #tpu.memory_space<vmem>>, %arg10: memref<1x128xf32, #tpu.memory_space<vmem>>, %arg11: memref<8x128xf32, #tpu.memory_space<vmem>>, %arg12: memref<8x128xf32, #tpu.memory_space<vmem>>) attributes {dimension_semantics = [#tpu.dimension_semantics<parallel>], iteration_bounds = array<i64: 1>, scalar_prefetch = 0 : i64, scratch_operands = 0 : i64, tpu.core_type = #tpu.core_type<tc>, window_params = [{transform_indices = @transform_0, window_bounds = array<i64: 8, 128>}, {transform_indices = @transform_1, window_bounds = array<i64: 8, 128>}, {pipeline_mode = #tpu.pipeline_mode<synchronous>, transform_indices = @transform_2, window_bounds = array<i64: 128, 128>}, {pipeline_mode = #tpu.pipeline_mode<synchronous>, transform_indices = @transform_3, window_bounds = array<i64: 1, 128>}, {pipeline_mode = #tpu.pipeline_mode<synchronous>, transform_indices = @transform_4, window_bounds = array<i64: 128, 384>}, {pipeline_mode = #tpu.pipeline_mode<synchronous>, transform_indices = @transform_5, window_bounds = array<i64: 128, 384>}, {pipeline_mode = #tpu.pipeline_mode<synchronous>, transform_indices = @transform_6, window_bounds = array<i64: 1, 384>}, {pipeline_mode = #tpu.pipeline_mode<synchronous>, transform_indices = @transform_7, window_bounds = array<i64: 1, 384>}, {pipeline_mode = #tpu.pipeline_mode<synchronous>, transform_indices = @transform_8, window_bounds = array<i64: 128, 128>}, {pipeline_mode = #tpu.pipeline_mode<synchronous>, transform_indices = @transform_9, window_bounds = array<i64: 1, 128>}, {transform_indices = @transform_10, window_bounds = array<i64: 8, 128>}, {transform_indices = @transform_11, window_bounds = array<i64: 8, 128>}]} {
    %c0 = arith.constant 0 : index
    %c0_0 = arith.constant 0 : index
    %0 = vector.load %arg1[%c0, %c0_0] : memref<8x128xf32, #tpu.memory_space<vmem>>, vector<8x128xf32>
    %c0_1 = arith.constant 0 : index
    %c0_2 = arith.constant 0 : index
    %1 = vector.load %arg2[%c0_1, %c0_2] : memref<8x128xf32, #tpu.memory_space<vmem>>, vector<8x128xf32>
    %c0_3 = arith.constant 0 : index
    %c0_4 = arith.constant 0 : index
    %2 = vector.load %arg3[%c0_3, %c0_4] : memref<128x128xf32, #tpu.memory_space<vmem>>, vector<128x128xf32>
    %cst = arith.constant dense<0.000000e+00> : vector<8x128xf32>
    %3 = tpu.matmul %0, %2, %cst {dimension_numbers = #tpu.dot_dimension_numbers<[1], [0], [0], [1], [0, 0, 1, 1], [], []>} : vector<8x128xf32>, vector<128x128xf32>, vector<8x128xf32> -> vector<8x128xf32>
    %c0_5 = arith.constant 0 : index
    %c0_6 = arith.constant 0 : index
    %4 = vector.load %arg4[%c0_5, %c0_6] : memref<1x128xf32, #tpu.memory_space<vmem>>, vector<1x128xf32>
    %5 = vector.broadcast %4 : vector<1x128xf32> to vector<8x128xf32>
    %6 = arith.addf %3, %5 : vector<8x128xf32>
    %7 = math.tanh %6 : vector<8x128xf32>
    %c0_7 = arith.constant 0 : index
    %c0_8 = arith.constant 0 : index
    %8 = vector.load %arg5[%c0_7, %c0_8] : memref<128x384xf32, #tpu.memory_space<vmem>>, vector<128x384xf32>
    %cst_9 = arith.constant dense<0.000000e+00> : vector<8x384xf32>
    %9 = tpu.matmul %7, %8, %cst_9 {dimension_numbers = #tpu.dot_dimension_numbers<[1], [0], [0], [1], [0, 0, 1, 1], [], []>} : vector<8x128xf32>, vector<128x384xf32>, vector<8x384xf32> -> vector<8x384xf32>
    %c0_10 = arith.constant 0 : index
    %c0_11 = arith.constant 0 : index
    %10 = vector.load %arg7[%c0_10, %c0_11] : memref<1x384xf32, #tpu.memory_space<vmem>>, vector<1x384xf32>
    %11 = vector.broadcast %10 : vector<1x384xf32> to vector<8x384xf32>
    %12 = arith.addf %9, %11 : vector<8x384xf32>
    %c0_12 = arith.constant 0 : index
    %c0_13 = arith.constant 0 : index
    %13 = vector.load %arg6[%c0_12, %c0_13] : memref<128x384xf32, #tpu.memory_space<vmem>>, vector<128x384xf32>
    %cst_14 = arith.constant dense<0.000000e+00> : vector<8x384xf32>
    %14 = tpu.matmul %1, %13, %cst_14 {dimension_numbers = #tpu.dot_dimension_numbers<[1], [0], [0], [1], [0, 0, 1, 1], [], []>} : vector<8x128xf32>, vector<128x384xf32>, vector<8x384xf32> -> vector<8x384xf32>
    %c0_15 = arith.constant 0 : index
    %c0_16 = arith.constant 0 : index
    %15 = vector.load %arg8[%c0_15, %c0_16] : memref<1x384xf32, #tpu.memory_space<vmem>>, vector<1x384xf32>
    %16 = vector.broadcast %15 : vector<1x384xf32> to vector<8x384xf32>
    %17 = arith.addf %14, %16 : vector<8x384xf32>
    %18 = vector.extract_strided_slice %12 {offsets = [0, 0], sizes = [8, 128], strides = [1, 1]} : vector<8x384xf32> to vector<8x128xf32>
    %19 = vector.extract_strided_slice %17 {offsets = [0, 0], sizes = [8, 128], strides = [1, 1]} : vector<8x384xf32> to vector<8x128xf32>
    %20 = arith.addf %18, %19 : vector<8x128xf32>
    %21 = arith.negf %20 : vector<8x128xf32>
    %22 = math.exp %21 : vector<8x128xf32>
    %cst_17 = arith.constant 1.000000e+00 : f32
    %23 = vector.broadcast %cst_17 : f32 to vector<8x128xf32>
    %24 = arith.addf %23, %22 : vector<8x128xf32>
    %25 = arith.divf %23, %24 : vector<8x128xf32>
    %26 = vector.extract_strided_slice %12 {offsets = [0, 128], sizes = [8, 128], strides = [1, 1]} : vector<8x384xf32> to vector<8x128xf32>
    %27 = vector.extract_strided_slice %17 {offsets = [0, 128], sizes = [8, 128], strides = [1, 1]} : vector<8x384xf32> to vector<8x128xf32>
    %28 = arith.addf %26, %27 : vector<8x128xf32>
    %29 = arith.negf %28 : vector<8x128xf32>
    %30 = math.exp %29 : vector<8x128xf32>
    %cst_18 = arith.constant 1.000000e+00 : f32
    %31 = vector.broadcast %cst_18 : f32 to vector<8x128xf32>
    %32 = arith.addf %31, %30 : vector<8x128xf32>
    %33 = arith.divf %31, %32 : vector<8x128xf32>
    %34 = vector.extract_strided_slice %12 {offsets = [0, 256], sizes = [8, 128], strides = [1, 1]} : vector<8x384xf32> to vector<8x128xf32>
    %35 = vector.extract_strided_slice %17 {offsets = [0, 256], sizes = [8, 128], strides = [1, 1]} : vector<8x384xf32> to vector<8x128xf32>
    %36 = arith.mulf %33, %35 : vector<8x128xf32>
    %37 = arith.addf %34, %36 : vector<8x128xf32>
    %38 = math.tanh %37 : vector<8x128xf32>
    %cst_19 = arith.constant 1.000000e+00 : f32
    %39 = vector.broadcast %cst_19 : f32 to vector<8x128xf32>
    %40 = arith.subf %39, %25 : vector<8x128xf32>
    %41 = arith.mulf %40, %38 : vector<8x128xf32>
    %42 = arith.mulf %25, %1 : vector<8x128xf32>
    %43 = arith.addf %41, %42 : vector<8x128xf32>
    %c0_20 = arith.constant 0 : index
    %c0_21 = arith.constant 0 : index
    %44 = vector.load %arg12[%c0_20, %c0_21] : memref<8x128xf32, #tpu.memory_space<vmem>>, vector<8x128xf32>
    tpu.vector_store %arg12[%c0_20, %c0_21], %43 {strides = array<i32>} : memref<8x128xf32, #tpu.memory_space<vmem>>, vector<8x128xf32>,
    %c0_22 = arith.constant 0 : index
    %c0_23 = arith.constant 0 : index
    %45 = vector.load %arg9[%c0_22, %c0_23] : memref<128x128xf32, #tpu.memory_space<vmem>>, vector<128x128xf32>
    %cst_24 = arith.constant dense<0.000000e+00> : vector<8x128xf32>
    %46 = tpu.matmul %43, %45, %cst_24 {dimension_numbers = #tpu.dot_dimension_numbers<[1], [0], [0], [1], [0, 0, 1, 1], [], []>} : vector<8x128xf32>, vector<128x128xf32>, vector<8x128xf32> -> vector<8x128xf32>
    %c0_25 = arith.constant 0 : index
    %c0_26 = arith.constant 0 : index
    %47 = vector.load %arg10[%c0_25, %c0_26] : memref<1x128xf32, #tpu.memory_space<vmem>>, vector<1x128xf32>
    %48 = vector.broadcast %47 : vector<1x128xf32> to vector<8x128xf32>
    %49 = arith.addf %46, %48 : vector<8x128xf32>
    %c0_27 = arith.constant 0 : index
    %c0_28 = arith.constant 0 : index
    %50 = vector.load %arg11[%c0_27, %c0_28] : memref<8x128xf32, #tpu.memory_space<vmem>>, vector<8x128xf32>
    tpu.vector_store %arg11[%c0_27, %c0_28], %49 {strides = array<i32>} : memref<8x128xf32, #tpu.memory_space<vmem>>, vector<8x128xf32>,
    return
  }
  func.func @transform_0(%arg0: i32) -> (i32, i32) {
    %c0_i32 = arith.constant 0 : i32
    %c0_i32_0 = arith.constant 0 : i32
    return %arg0, %c0_i32 : i32, i32
  }
  func.func @transform_1(%arg0: i32) -> (i32, i32) {
    %c0_i32 = arith.constant 0 : i32
    %c0_i32_0 = arith.constant 0 : i32
    return %arg0, %c0_i32 : i32, i32
  }
  func.func @transform_2(%arg0: i32) -> (i32, i32) {
    %c0_i32 = arith.constant 0 : i32
    %c0_i32_0 = arith.constant 0 : i32
    %c0_i32_1 = arith.constant 0 : i32
    return %c0_i32, %c0_i32_0 : i32, i32
  }
  func.func @transform_3(%arg0: i32) -> (i32, i32) {
    %c0_i32 = arith.constant 0 : i32
    %c0_i32_0 = arith.constant 0 : i32
    %c0_i32_1 = arith.constant 0 : i32
    return %c0_i32, %c0_i32_0 : i32, i32
  }
  func.func @transform_4(%arg0: i32) -> (i32, i32) {
    %c0_i32 = arith.constant 0 : i32
    %c0_i32_0 = arith.constant 0 : i32
    %c0_i32_1 = arith.constant 0 : i32
    return %c0_i32, %c0_i32_0 : i32, i32
  }
  func.func @transform_5(%arg0: i32) -> (i32, i32) {
    %c0_i32 = arith.constant 0 : i32
    %c0_i32_0 = arith.constant 0 : i32
    %c0_i32_1 = arith.constant 0 : i32
    return %c0_i32, %c0_i32_0 : i32, i32
  }
  func.func @transform_6(%arg0: i32) -> (i32, i32) {
    %c0_i32 = arith.constant 0 : i32
    %c0_i32_0 = arith.constant 0 : i32
    %c0_i32_1 = arith.constant 0 : i32
    return %c0_i32, %c0_i32_0 : i32, i32
  }
  func.func @transform_7(%arg0: i32) -> (i32, i32) {
    %c0_i32 = arith.constant 0 : i32
    %c0_i32_0 = arith.constant 0 : i32
    %c0_i32_1 = arith.constant 0 : i32
    return %c0_i32, %c0_i32_0 : i32, i32
  }
  func.func @transform_8(%arg0: i32) -> (i32, i32) {
    %c0_i32 = arith.constant 0 : i32
    %c0_i32_0 = arith.constant 0 : i32
    %c0_i32_1 = arith.constant 0 : i32
    return %c0_i32, %c0_i32_0 : i32, i32
  }
  func.func @transform_9(%arg0: i32) -> (i32, i32) {
    %c0_i32 = arith.constant 0 : i32
    %c0_i32_0 = arith.constant 0 : i32
    %c0_i32_1 = arith.constant 0 : i32
    return %c0_i32, %c0_i32_0 : i32, i32
  }
  func.func @transform_10(%arg0: i32) -> (i32, i32) {
    %c0_i32 = arith.constant 0 : i32
    %c0_i32_0 = arith.constant 0 : i32
    return %arg0, %c0_i32 : i32, i32
  }
  func.func @transform_11(%arg0: i32) -> (i32, i32) {
    %c0_i32 = arith.constant 0 : i32
    %c0_i32_0 = arith.constant 0 : i32
    return %arg0, %c0_i32 : i32, i32
  }
}

</mosaic_0001>

<bundles_post_ra>
// kernel: actor_critic_forward.1
= control target key start
LH: loop header
LB: loop body
LE: loop exit
PB: predicated region body
PF: predicated region fallthrough
CT: control target
= control target key end

     0   :  { %17 = vsyncpa [#allocation3], 0  ;;  %s721_s0 = inlined_call_operand.vmem [shape: f32[8,128], index: 0, kind: input, shape index: {}]   ;;  %s722_s1 = inlined_call_operand.vmem [shape: f32[8,128], index: 1, kind: input, shape index: {}, may-alias: {1,11}]   ;;  %s723_s2 = inlined_call_operand.hbm [shape: f32[128,128], index: 2, kind: input, shape index: {}]   ;;  %s724_s3 = inlined_call_operand.vmem [shape: f32[1,128], index: 3, kind: input, shape index: {}]   ;;  %s725_s4 = inlined_call_operand.hbm [shape: f32[128,384], index: 4, kind: input, shape index: {}]   ;;  %s726_s5 = inlined_call_operand.hbm [shape: f32[128,384], index: 5, kind: input, shape index: {}]   ;;  %s727_s6 = inlined_call_operand.vmem [shape: f32[1,384], index: 6, kind: input, shape index: {}]   ;;  %s728_s7 = inlined_call_operand.vmem [shape: f32[1,384], index: 7, kind: input, shape index: {}]   ;;  %s729_s8 = inlined_call_operand.hbm [shape: f32[128,128], index: 8, kind: input, shape index: {}]   ;;  %s730_s9 = inlined_call_operand.vmem [shape: f32[1,128], index: 9, kind: input, shape index: {}]   ;;  %s731_s10 = inlined_call_operand.vmem [shape: f32[8,128], index: 10, kind: output, shape index: {0}]   ;;  %s732_s11 = inlined_call_operand.vmem [shape: f32[8,128], index: 11, kind: output, shape index: {1}, may-alias: {1,11}]  }
   0x1   :  { %18 = vsyncpa [#allocation5], 0  ;;  %s43_s19 = sshll.u32 %s725_s4, 4  ;;  %s44_s19 = int_to_ptr.hbm [resolvable:$true] %s43_s19 }
   0x2   :  { %19 = vsyncpa [#allocation8], 0  ;;  %s601_s20 = smov [#allocation4]   ;;  %s28_s24 = sshll.u32 %s723_s2, 4  ;;  %s29_s24 = int_to_ptr.hbm [resolvable:$true] %s28_s24 }
   0x3   :  { %s45_s21 = sshll.u32 %s601_s20, 4  ;;  %s602_s25 = smov 384   ;;  %s46_s21 = int_to_ptr.vmem [resolvable:$true] %s45_s21 }
   0x4   :  { %s603_s26 = smov 24   ;;  %s604_s27 = smov [#allocation2]  }
   0x5   :  { %51 = dma.hbm_to_vmem [thread:$0]  %s44_s19, 6144, %s46_s21, [#allocation5], %s602_s25, %s602_s25, %s603_s26  }
   0x6   :  { %s30_s28 = sshll.u32 %s604_s27, 4  ;;  %s605_s29 = smov 128   ;;  %s31_s28 = int_to_ptr.vmem [resolvable:$true] %s30_s28 }
   0x7   :  { %s606_s30 = smov 8   ;;  %s56_s13 = sshll.u32 %s726_s5, 4  ;;  %s57_s13 = int_to_ptr.hbm [resolvable:$true] %s56_s13 }
   0x8   :  { %36 = dma.hbm_to_vmem [thread:$0]  %s29_s24, 2048, %s31_s28, [#allocation3], %s605_s29, %s605_s29, %s606_s30  }
   0x9   :  { %s607_s14 = smov [#allocation6]   ;;  %s73_s17 = sshll.u32 %s729_s8, 4  ;;  %s74_s17 = int_to_ptr.hbm [resolvable:$true] %s73_s17 }
   0xa   :  { %s58_s15 = sshll.u32 %s607_s14, 4  ;;  %s608_s18 = smov [#allocation7]   ;;  %s59_s15 = int_to_ptr.vmem [resolvable:$true] %s58_s15 }
   0xb   :  { %64 = dma.hbm_to_vmem [thread:$0]  %s57_s13, 6144, %s59_s15, [#allocation5], %s602_s25, %s602_s25, %s603_s26  }
   0xc   :  { %s75_s19 = sshll.u32 %s608_s18, 4  ;;  %s76_s19 = int_to_ptr.vmem [resolvable:$true] %s75_s19 }
   0xd   :  { %81 = dma.hbm_to_vmem [thread:$0]  %s74_s17, 2048, %s76_s19, [#allocation8], %s605_s29, %s605_s29, %s606_s30  }
   0xe   :  { %595 = dma.done.wait [#allocation3], 2048  }
   0xf   :  { %596 = vsyncadd [#allocation3], 4294965248 }
  0x10   :  { %597 = dma.done.wait [#allocation5], 12288  }
  0x11   :  { %598 = vsyncadd [#allocation5], 4294955008 }
  0x12   :  { %599 = dma.done.wait [#allocation8], 2048  }
  0x13   :  { %600 = vsyncadd [#allocation8], 4294965248  ;;  %v117_v0 = vld [vmem:[#allocation2 + $0x78] sm:$0xff]  ;;  %v116_v1 = vld [vmem:[#allocation2 + $0x70] sm:$0xff] }
  0x14   :  { %122 = vmatpush.msra.mxu0 %v117_v0  ;;  %v115_v2 = vld [vmem:[#allocation2 + $0x68] sm:$0xff]  ;;  %v114_v3 = vld [vmem:[#allocation2 + $0x60] sm:$0xff]  ;;  %v113_v5 = vld [vmem:[#allocation2 + $0x58] sm:$0xff] }
  0x15   :  { %v188_v4 = vld [vmem:[#allocation4 + $0x168] sm:$0xff]  ;;  %v185_v6 = vld [vmem:[#allocation4 + $0x150] sm:$0xff]  ;;  %v182_v7 = vld [vmem:[#allocation4 + $0x138] sm:$0xff] }
  0x16   :  { %123 = vmatpush.msra.mxu0 %v116_v1  ;;  %199 = vmatpush.msra.mxu1 %v188_v4  ;;  %v112_v8 = vld [vmem:[#allocation2 + $0x50] sm:$0xff]  ;;  %v179_v9 = vld [vmem:[#allocation4 + $0x120] sm:$0xff]  ;;  %v111_v11 = vld [vmem:[#allocation2 + $0x48] sm:$0xff] }
  0x17   :  { %v189_v10 = vld [vmem:[#allocation4 + $0x170] sm:$0xff]  ;;  %v190_v12 = vld [vmem:[#allocation4 + $0x178] sm:$0xff]  ;;  %v176_v13 = vld [vmem:[#allocation4 + $0x108] sm:$0xff] }
  0x18   :  { %124 = vmatpush.msra.mxu0 %v115_v2  ;;  %200 = vmatpush.msra.mxu1 %v185_v6  ;;  %v186_v14 = vld [vmem:[#allocation4 + $0x158] sm:$0xff]  ;;  %v187_v15 = vld [vmem:[#allocation4 + $0x160] sm:$0xff]  ;;  %v184_v18 = vld [vmem:[#allocation4 + $0x148] sm:$0xff] }
  0x19   :  { %219 = vmatpush.msra.mxu2 %v189_v10  ;;  %239 = vmatpush.msra.mxu3 %v190_v12  ;;  %v110_v16 = vld [vmem:[#allocation2 + $0x40] sm:$0xff]  ;;  %v173_v19 = vld [vmem:[#allocation4 + $0xf0] sm:$0xff]  ;;  %v180_v20 = vld [vmem:[#allocation4 + $0x128] sm:$0xff] }
  0x1a   :  { %125 = vmatpush.msra.mxu0 %v114_v3  ;;  %201 = vmatpush.msra.mxu1 %v182_v7  ;;  %v183_v17 = vld [vmem:[#allocation4 + $0x140] sm:$0xff]  ;;  %v109_v21 = vld [vmem:[#allocation2 + $0x38] sm:$0xff]  ;;  %v181_v22 = vld [vmem:[#allocation4 + $0x130] sm:$0xff] }
  0x1b   :  { %220 = vmatpush.msra.mxu2 %v186_v14  ;;  %240 = vmatpush.msra.mxu3 %v187_v15  ;;  %v170_v23 = vld [vmem:[#allocation4 + $0xd8] sm:$0xff]  ;;  %v177_v24 = vld [vmem:[#allocation4 + $0x110] sm:$0xff]  ;;  %v167_v27 = vld [vmem:[#allocation4 + $0xc0] sm:$0xff] }
  0x1c   :  { %126 = vmatpush.msra.mxu0 %v113_v5  ;;  %202 = vmatpush.msra.mxu1 %v179_v9  ;;  %v108_v25 = vld [vmem:[#allocation2 + $0x30] sm:$0xff]  ;;  %v178_v26 = vld [vmem:[#allocation4 + $0x118] sm:$0xff]  ;;  %v107_v29 = vld [vmem:[#allocation2 + $0x28] sm:$0xff] }
  0x1d   :  { %221 = vmatpush.msra.mxu2 %v183_v17  ;;  %241 = vmatpush.msra.mxu3 %v184_v18  ;;  %v174_v28 = vld [vmem:[#allocation4 + $0xf8] sm:$0xff]  ;;  %v175_v30 = vld [vmem:[#allocation4 + $0x100] sm:$0xff]  ;;  %v164_v31 = vld [vmem:[#allocation4 + $0xa8] sm:$0xff] }
  0x1e   :  { %127 = vmatpush.msra.mxu0 %v112_v8  ;;  %203 = vmatpush.msra.mxu1 %v176_v13  ;;  %v171_v32 = vld [vmem:[#allocation4 + $0xe0] sm:$0xff]  ;;  %v172_v34 = vld [vmem:[#allocation4 + $0xe8] sm:$0xff]  ;;  %v161_v35 = vld [vmem:[#allocation4 + $0x90] sm:$0xff] }
  0x1f   :  { %222 = vmatpush.msra.mxu2 %v180_v20  ;;  %242 = vmatpush.msra.mxu3 %v181_v22  ;;  %v106_v33 = vld [vmem:[#allocation2 + $0x20] sm:$0xff]  ;;  %v168_v36 = vld [vmem:[#allocation4 + $0xc8] sm:$0xff]  ;;  %v105_v37 = vld [vmem:[#allocation2 + $0x18] sm:$0xff] }
  0x20   :  { %128 = vmatpush.msra.mxu0 %v111_v11  ;;  %204 = vmatpush.msra.mxu1 %v173_v19  ;;  %v169_v38 = vld [vmem:[#allocation4 + $0xd0] sm:$0xff]  ;;  %v158_v39 = vld [vmem:[#allocation4 + $0x78] sm:$0xff]  ;;  %v155_v43 = vld [vmem:[#allocation4 + $0x60] sm:$0xff] }
  0x21   :  { %223 = vmatpush.msra.mxu2 %v177_v24  ;;  %243 = vmatpush.msra.mxu3 %v178_v26  ;;  %v165_v40 = vld [vmem:[#allocation4 + $0xb0] sm:$0xff]  ;;  %v166_v42 = vld [vmem:[#allocation4 + $0xb8] sm:$0xff]  ;;  %v103_v45 = vld [vmem:[#allocation2 + $0x8] sm:$0xff] }
  0x22   :  { %129 = vmatpush.msra.mxu0 %v110_v16  ;;  %205 = vmatpush.msra.mxu1 %v170_v23  ;;  %v104_v41 = vld [vmem:[#allocation2 + $0x10] sm:$0xff]  ;;  %v162_v44 = vld [vmem:[#allocation4 + $0x98] sm:$0xff]  ;;  %v163_v46 = vld [vmem:[#allocation4 + $0xa0] sm:$0xff] }
  0x23   :  { %224 = vmatpush.msra.mxu2 %v174_v28  ;;  %244 = vmatpush.msra.mxu3 %v175_v30  ;;  %v152_v47 = vld [vmem:[#allocation4 + $0x48] sm:$0xff]  ;;  %v159_v48 = vld [vmem:[#allocation4 + $0x80] sm:$0xff]  ;;  %v149_v52 = vld [vmem:[#allocation4 + $0x30] sm:$0xff] }
  0x24   :  { %130 = vmatpush.msra.mxu0 %v109_v21  ;;  %206 = vmatpush.msra.mxu1 %v167_v27  ;;  %v102_v49 = vld [vmem:[#allocation2] sm:$0xff]  ;;  %v160_v50 = vld [vmem:[#allocation4 + $0x88] sm:$0xff]  ;;  %v146_v54 = vld [vmem:[#allocation4 + $0x18] sm:$0xff] }
  0x25   :  { %225 = vmatpush.msra.mxu2 %v171_v32  ;;  %245 = vmatpush.msra.mxu3 %v172_v34  ;;  %v100_v51 = vld [vmem:[%s721_s0] sm:$0xff]  ;;  %v304_v53 = vld [vmem:[#allocation6 + $0x168] sm:$0xff]  ;;  %v301_v55 = vld [vmem:[#allocation6 + $0x150] sm:$0xff] }
  0x26   :  { %131 = vmatpush.msra.mxu0 %v108_v25  ;;  %207 = vmatpush.msra.mxu1 %v164_v31  ;;  %v143_v56 = vld [vmem:[#allocation4] sm:$0xff]  ;;  %v298_v57 = vld [vmem:[#allocation6 + $0x138] sm:$0xff]  ;;  %v305_v58 = vld [vmem:[#allocation6 + $0x170] sm:$0xff] }
  0x27   :  { %226 = vmatpush.msra.mxu2 %v168_v36  ;;  %246 = vmatpush.msra.mxu3 %v169_v38  ;;  %v295_v59 = vld [vmem:[#allocation6 + $0x120] sm:$0xff]  ;;  %v302_v60 = vld [vmem:[#allocation6 + $0x158] sm:$0xff]  ;;  %v292_v61 = vld [vmem:[#allocation6 + $0x108] sm:$0xff] }
  0x28   :  { %132 = vmatpush.msra.mxu0 %v107_v29  ;;  %208 = vmatpush.msra.mxu1 %v161_v35  ;;  %v299_v62 = vld [vmem:[#allocation6 + $0x140] sm:$0xff]  ;;  %v289_v63 = vld [vmem:[#allocation6 + $0xf0] sm:$0xff]  ;;  %v296_v0 = vld [vmem:[#allocation6 + $0x128] sm:$0xff] }
  0x29   :  { %227 = vmatpush.msra.mxu2 %v165_v40  ;;  %247 = vmatpush.msra.mxu3 %v166_v42  ;;  %v286_v1 = vld [vmem:[#allocation6 + $0xd8] sm:$0xff]  ;;  %v293_v2 = vld [vmem:[#allocation6 + $0x110] sm:$0xff]  ;;  %v283_v3 = vld [vmem:[#allocation6 + $0xc0] sm:$0xff] }
  0x2a   :  { %133 = vmatpush.msra.mxu0 %v106_v33  ;;  %209 = vmatpush.msra.mxu1 %v158_v39  ;;  %v290_v4 = vld [vmem:[#allocation6 + $0xf8] sm:$0xff]  ;;  %v280_v5 = vld [vmem:[#allocation6 + $0xa8] sm:$0xff]  ;;  %v287_v6 = vld [vmem:[#allocation6 + $0xe0] sm:$0xff] }
  0x2b   :  { %228 = vmatpush.msra.mxu2 %v162_v44  ;;  %248 = vmatpush.msra.mxu3 %v163_v46  ;;  %v277_v7 = vld [vmem:[#allocation6 + $0x90] sm:$0xff]  ;;  %v274_v8 = vld [vmem:[#allocation6 + $0x78] sm:$0xff]  ;;  %v156_v9 = vld [vmem:[#allocation4 + $0x68] sm:$0xff] }
  0x2c   :  { %134 = vmatpush.msra.mxu0 %v105_v37  ;;  %210 = vmatpush.msra.mxu1 %v155_v43  ;;  %v157_v10 = vld [vmem:[#allocation4 + $0x70] sm:$0xff]  ;;  %v271_v11 = vld [vmem:[#allocation6 + $0x60] sm:$0xff]  ;;  %v284_v12 = vld [vmem:[#allocation6 + $0xc8] sm:$0xff] }
  0x2d   :  { %229 = vmatpush.msra.mxu2 %v159_v48  ;;  %249 = vmatpush.msra.mxu3 %v160_v50  ;;  %v153_v13 = vld [vmem:[#allocation4 + $0x50] sm:$0xff]  ;;  %v154_v14 = vld [vmem:[#allocation4 + $0x58] sm:$0xff]  ;;  %v268_v15 = vld [vmem:[#allocation6 + $0x48] sm:$0xff] }
  0x2e   :  { %135 = vmatpush.msra.mxu0 %v104_v41  ;;  %211 = vmatpush.msra.mxu1 %v152_v47  ;;  %v281_v16 = vld [vmem:[#allocation6 + $0xb0] sm:$0xff]  ;;  %v150_v17 = vld [vmem:[#allocation4 + $0x38] sm:$0xff]  ;;  %v151_v18 = vld [vmem:[#allocation4 + $0x40] sm:$0xff] }
  0x2f   :  { %230 = vmatpush.msra.mxu2 %v156_v9  ;;  %250 = vmatpush.msra.mxu3 %v157_v10  ;;  %v265_v19 = vld [vmem:[#allocation6 + $0x30] sm:$0xff]  ;;  %v278_v20 = vld [vmem:[#allocation6 + $0x98] sm:$0xff]  ;;  %v147_v21 = vld [vmem:[#allocation4 + $0x20] sm:$0xff] }
  0x30   :  { %136 = vmatpush.msra.mxu0 %v103_v45  ;;  %212 = vmatpush.msra.mxu1 %v149_v52  ;;  %v148_v22 = vld [vmem:[#allocation4 + $0x28] sm:$0xff]  ;;  %v262_v23 = vld [vmem:[#allocation6 + $0x18] sm:$0xff]  ;;  %v275_v24 = vld [vmem:[#allocation6 + $0x80] sm:$0xff] }
  0x31   :  { %231 = vmatpush.msra.mxu2 %v153_v13  ;;  %251 = vmatpush.msra.mxu3 %v154_v14  ;;  %v144_v25 = vld [vmem:[#allocation4 + $0x8] sm:$0xff]  ;;  %v145_v26 = vld [vmem:[#allocation4 + $0x10] sm:$0xff]  ;;  %v259_v27 = vld [vmem:[#allocation6] sm:$0xff] }
  0x32   :  { %137 = vmatpush.msra.mxu0 %v102_v49  ;;  %213 = vmatpush.msra.mxu1 %v146_v54  ;;  %v272_v28 = vld [vmem:[#allocation6 + $0x68] sm:$0xff]  ;;  %v687_v29 = vld [vmem:[%s722_s1] sm:$0xff]  ;;  %v269_v30 = vld [vmem:[#allocation6 + $0x50] sm:$0xff] }
  0x33   :  { %138 = vmatmul.f32.vlgmr.msra.gmra.mxu0 %v100_v51  ;;  %232 = vmatpush.msra.mxu2 %v150_v17  ;;  %v306_v31 = vld [vmem:[#allocation6 + $0x178] sm:$0xff]  ;;  %v303_v33 = vld [vmem:[#allocation6 + $0x160] sm:$0xff]  ;;  %v300_v35 = vld [vmem:[#allocation6 + $0x148] sm:$0xff] }
  0x34   :  { %315 = vmatpush.msrb.mxu0 %v304_v53  ;;  %214 = vmatpush.msra.mxu1 %v143_v56  ;;  %v266_v32 = vld [vmem:[#allocation6 + $0x38] sm:$0xff]  ;;  %v263_v34 = vld [vmem:[#allocation6 + $0x20] sm:$0xff]  ;;  %v260_v36 = vld [vmem:[#allocation6 + $0x8] sm:$0xff] }
  0x35   :  { %252 = vmatpush.msra.mxu3 %v151_v18  ;;  %233 = vmatpush.msra.mxu2 %v147_v21  ;;  %v297_v37 = vld [vmem:[#allocation6 + $0x130] sm:$0xff]  ;;  %v294_v38 = vld [vmem:[#allocation6 + $0x118] sm:$0xff]  ;;  %v291_v39 = vld [vmem:[#allocation6 + $0x100] sm:$0xff] }
  0x36   :  { %316 = vmatpush.msrb.mxu0 %v301_v55  ;;  %335 = vmatpush.msrb.mxu1 %v305_v58  ;;  %v288_v40 = vld [vmem:[#allocation6 + $0xe8] sm:$0xff]  ;;  %v285_v41 = vld [vmem:[#allocation6 + $0xd0] sm:$0xff]  ;;  %v282_v42 = vld [vmem:[#allocation6 + $0xb8] sm:$0xff] }
  0x37   :  { %253 = vmatpush.msra.mxu3 %v148_v22  ;;  %234 = vmatpush.msra.mxu2 %v144_v25  ;;  %v279_v43 = vld [vmem:[#allocation6 + $0xa0] sm:$0xff]  ;;  %v276_v45 = vld [vmem:[#allocation6 + $0x88] sm:$0xff]  ;;  %v273_v46 = vld [vmem:[#allocation6 + $0x70] sm:$0xff] }
  0x38   :  { %317 = vmatpush.msrb.mxu0 %v298_v57  ;;  %336 = vmatpush.msrb.mxu1 %v302_v60  ;;  %v485_v44 = vld [vmem:[%s724_s3] ss:$0 sm:$0xff]  ;;  %v270_v49 = vld [vmem:[#allocation6 + $0x58] sm:$0xff]  ;;  %v264_v51 = vld [vmem:[#allocation6 + $0x28] sm:$0xff] }
  0x39   :  { %254 = vmatpush.msra.mxu3 %v145_v26  ;;  %355 = vmatpush.msrb.mxu2 %v306_v31  ;;  %v267_v50 = vld [vmem:[#allocation6 + $0x40] sm:$0xff]  ;;  %v261_v52 = vld [vmem:[#allocation6 + $0x10] sm:$0xff]  ;;  %v438_v55 = vld [vmem:[#allocation7 + $0x78] sm:$0xff] }
  0x3a   :  { %318 = vmatpush.msrb.mxu0 %v295_v59  ;;  %337 = vmatpush.msrb.mxu1 %v299_v62  ;;  %v698_v54 = vld [vmem:[%s728_s7] sm:$0x7]  ;;  %v437_v56 = vld [vmem:[#allocation7 + $0x70] sm:$0xff]  ;;  %v436_v58 = vld [vmem:[#allocation7 + $0x68] sm:$0xff] }
  0x3b   :  { %356 = vmatpush.msrb.mxu2 %v303_v33  ;;  %443 = vmatpush.msrb.mxu3 %v438_v55  ;;  %v703_v57 = vld [vmem:[%s727_s6] sm:$0x7]  ;;  %v309_v59 = vperm.slane %v698_v54, 0  ;;  %v430_v14 = vld [vmem:[#allocation7 + $0x38] sm:$0xff] }
  0x3c   :  { %319 = vmatpush.msrb.mxu0 %v292_v61  ;;  %338 = vmatpush.msrb.mxu1 %v296_v0  ;;  %v435_v61 = vld [vmem:[#allocation7 + $0x60] sm:$0xff]  ;;  %v193_v62 = vperm.slane %v703_v57, 0  ;;  %v426_v22 = vld [vmem:[#allocation7 + $0x18] sm:$0xff] }
  0x3d   :  { %357 = vmatpush.msrb.mxu2 %v300_v35  ;;  %444 = vmatpush.msrb.mxu3 %v437_v56  ;;  %v431_v10 = vld [vmem:[#allocation7 + $0x40] sm:$0xff] }
  0x3e   :  { %320 = vmatpush.msrb.mxu0 %v289_v63  ;;  %339 = vmatpush.msrb.mxu1 %v293_v2  ;;  %v434_v63 = vld [vmem:[#allocation7 + $0x58] sm:$0xff]  ;;  %v433_v2 = vld [vmem:[#allocation7 + $0x50] sm:$0xff]  ;;  %v423_v26 = vld [vmem:[#allocation7] sm:$0xff] }
  0x3f   :  { %358 = vmatpush.msrb.mxu2 %v297_v37  ;;  %445 = vmatpush.msrb.mxu3 %v436_v58 }
  0x40   :  { %321 = vmatpush.msrb.mxu0 %v286_v1  ;;  %340 = vmatpush.msrb.mxu1 %v290_v4  ;;  %v432_v4 = vld [vmem:[#allocation7 + $0x48] sm:$0xff] }
  0x41   :  { %359 = vmatpush.msrb.mxu2 %v294_v38  ;;  %446 = vmatpush.msrb.mxu3 %v435_v61 }
  0x42   :  { %322 = vmatpush.msrb.mxu0 %v283_v3  ;;  %341 = vmatpush.msrb.mxu1 %v287_v6 }
  0x43   :  { %360 = vmatpush.msrb.mxu2 %v291_v39  ;;  %447 = vmatpush.msrb.mxu3 %v434_v63 }
  0x44   :  { %323 = vmatpush.msrb.mxu0 %v280_v5  ;;  %342 = vmatpush.msrb.mxu1 %v284_v12 }
  0x45   :  { %361 = vmatpush.msrb.mxu2 %v288_v40  ;;  %448 = vmatpush.msrb.mxu3 %v433_v2 }
  0x46   :  { %324 = vmatpush.msrb.mxu0 %v277_v7  ;;  %343 = vmatpush.msrb.mxu1 %v281_v16  ;;  %v194_v7 = vperm.slane %v703_v57, 1  ;;  %v429_v16 = vld [vmem:[#allocation7 + $0x30] sm:$0xff] }
  0x47   :  { %362 = vmatpush.msrb.mxu2 %v285_v41  ;;  %449 = vmatpush.msrb.mxu3 %v432_v4  ;;  %v195_v41 = vperm.slane %v703_v57, 2 }
  0x48   :  { %325 = vmatpush.msrb.mxu0 %v274_v8  ;;  %344 = vmatpush.msrb.mxu1 %v278_v20  ;;  %v310_v8 = vperm.slane %v698_v54, 1  ;;  %v427_v20 = vld [vmem:[#allocation7 + $0x20] sm:$0xff] }
  0x49   :  { %363 = vmatpush.msrb.mxu2 %v282_v42  ;;  %450 = vmatpush.msrb.mxu3 %v431_v10 }
  0x4a   :  { %326 = vmatpush.msrb.mxu0 %v271_v11  ;;  %345 = vmatpush.msrb.mxu1 %v275_v24  ;;  %v424_v24 = vld [vmem:[#allocation7 + $0x8] sm:$0xff] }
  0x4b   :  { %364 = vmatpush.msrb.mxu2 %v279_v43  ;;  %451 = vmatpush.msrb.mxu3 %v430_v14 }
  0x4c   :  { %327 = vmatpush.msrb.mxu0 %v268_v15  ;;  %346 = vmatpush.msrb.mxu1 %v272_v28 }
  0x4d   :  { %365 = vmatpush.msrb.mxu2 %v276_v45  ;;  %452 = vmatpush.msrb.mxu3 %v429_v16 }
  0x4e   :  { %328 = vmatpush.msrb.mxu0 %v265_v19  ;;  %347 = vmatpush.msrb.mxu1 %v269_v30  ;;  %v428_v19 = vld [vmem:[#allocation7 + $0x28] sm:$0xff] }
  0x4f   :  { %366 = vmatpush.msrb.mxu2 %v273_v46  ;;  %453 = vmatpush.msrb.mxu3 %v428_v19 }
  0x50   :  { %329 = vmatpush.msrb.mxu0 %v262_v23  ;;  %348 = vmatpush.msrb.mxu1 %v266_v32  ;;  %v425_v23 = vld [vmem:[#allocation7 + $0x10] sm:$0xff] }
  0x51   :  { %367 = vmatpush.msrb.mxu2 %v270_v49  ;;  %454 = vmatpush.msrb.mxu3 %v427_v20 }
  0x52   :  { %330 = vmatpush.msrb.mxu0 %v259_v27  ;;  %349 = vmatpush.msrb.mxu1 %v263_v34  ;;  %v311_v34 = vperm.slane %v698_v54, 2 }
  0x53   :  { %331 = vmatmul.f32.vlgmr.msrb.gmra.mxu0 %v687_v29  ;;  %368 = vmatpush.msrb.mxu2 %v267_v50 }
  0x54   :  { %350 = vmatpush.msrb.mxu1 %v260_v36  ;;  %455 = vmatpush.msrb.mxu3 %v426_v22 }
  0x55   :  { %369 = vmatpush.msrb.mxu2 %v264_v51 }
  0x56   :  { %456 = vmatpush.msrb.mxu3 %v425_v23 }
  0x57   :  { %370 = vmatpush.msrb.mxu2 %v261_v52 }
  0x58   :  { %457 = vmatpush.msrb.mxu3 %v424_v24 }
  0x5a   :  { %458 = vmatpush.msrb.mxu3 %v423_v26 }
  0xb0   :  { %v139_v47 = vpop.f32.mrf.mxu0 }
  0xb1   :  { %v140_v48 = vadd.f32 %v485_v44, %v139_v47 }
  0xb3   :  { %487 = vtanh.f32 %v140_v48 }
  0xb9   :  { %v488_v53 = vpop.eup %487 }
  0xba   :  { %215 = vmatmul.f32.vlgmr.msra.gmra.mxu1 %v488_v53  ;;  %235 = vmatmul.f32.vlgmr.msra.gmra.mxu2 %v488_v53 }
  0xbb   :  { %255 = vmatmul.f32.vlgmr.msra.gmra.mxu3 %v488_v53 }
  0xc2   :  { %351 = vmatmul.f32.vlgmr.msrb.gmra.mxu1 %v687_v29  ;;  %371 = vmatmul.f32.vlgmr.msrb.gmra.mxu2 %v687_v29 }
  0xd0   :  { %v332_v60 = vpop.f32.mrf.mxu0 }
  0xd1   :  { %v333_v0 = vadd.f32 %v332_v60, %v309_v59 }
 0x137   :  { %v216_v1 = vpop.f32.mrf.mxu1 }
 0x138   :  { %v217_v3 = vadd.f32 %v216_v1, %v193_v62  ;;  %v486_v62 = vld [vmem:[%s730_s9] ss:$0 sm:$0xff] }
 0x13a   :  { %v375_v5 = vadd.f32 %v333_v0, %v217_v3 }
 0x13c   :  { %v475_v6 = vmul.f32 -1.442695, %v375_v5 }
 0x13d   :  { %v236_v9 = vpop.f32.mrf.mxu2 }
 0x13e   :  { %489 = vpow2.f32 %v475_v6  ;;  %v237_v12 = vadd.f32 %v236_v9, %v194_v7  ;;  %v256_v44 = vpop.f32.mrf.mxu3 }
 0x13f   :  { %v352_v11 = vpop.f32.mrf.mxu1  ;;  %v257_v49 = vadd.f32 %v256_v44, %v195_v41 }
 0x140   :  { %v353_v13 = vadd.f32 %v352_v11, %v310_v8 }
 0x142   :  { %v395_v15 = vadd.f32 %v353_v13, %v237_v12 }
 0x144   :  { %v490_v17 = vpop.eup %489  ;;  %v476_v18 = vmul.f32 -1.442695, %v395_v15 }
 0x145   :  { %v379_v21 = vadd.f32 1.0, %v490_v17  ;;  %v372_v36 = vpop.f32.mrf.mxu2 }
 0x146   :  { %491 = vpow2.f32 %v476_v18  ;;  %v373_v42 = vadd.f32 %v372_v36, %v311_v34 }
 0x147   :  { %493 = vrcp.f32 %v379_v21  ;;  %v391_v51 = vand.u32 2147483648, %v379_v21  ;;  %vm385_vm5 = vweird.f32 %v379_v21  ;;  %v389_v52 = vand.u32 2147483647, %v379_v21 }
 0x149   :  { %v392_v55 = vor.u32 1.1754944e-38, %v391_v51  ;;  %vm390_vm7 = vcmp.eq.f32.partialorder %v389_v52, 8.507059e+37 }
 0x14c   :  { %v492_v25 = vpop.eup %491 }
 0x14d   :  { %v399_v27 = vadd.f32 1.0, %v492_v25  ;;  %v494_v28 = vpop.eup %493 }
 0x14e   :  { %v381_v30 = vmul.f32 %v494_v28, %v379_v21  ;;  %vm386_vm4 = vweird.f32 %v494_v28 }
 0x14f   :  { %495 = vrcp.f32 %v399_v27  ;;  %v411_v37 = vand.u32 2147483648, %v399_v27  ;;  %v409_v39 = vand.u32 2147483647, %v399_v27  ;;  %vm405_vm1 = vweird.f32 %v399_v27  ;;  %vm387_vm6 = vmor %vm385_vm5, %vm386_vm4 }
 0x150   :  { %v382_v33 = vsub.f32 1.0, %v381_v30 }
 0x151   :  { %v412_v45 = vor.u32 1.1754944e-38, %v411_v37  ;;  %vm410_vm3 = vcmp.eq.f32.partialorder %v409_v39, 8.507059e+37 }
 0x152   :  { %v383_v40 = vmul.f32 %v494_v28, %v382_v33 }
 0x154   :  { %v384_v48 = vadd.f32 %v494_v28, %v383_v40 }
 0x155   :  { %v496_v31 = vpop.eup %495 }
 0x156   :  { %v401_v32 = vmul.f32 %v496_v31, %v399_v27  ;;  %vm406_vm0 = vweird.f32 %v496_v31  ;;  %v388_v54 = vsel %vm387_vm6, %v494_v28, %v384_v48 }
 0x157   :  { %vm407_vm2 = vmor %vm405_vm1, %vm406_vm0  ;;  %v393_v56 = vsel %vm390_vm7, %v392_v55, %v388_v54 }
 0x158   :  { %v402_v35 = vsub.f32 1.0, %v401_v32  ;;  %v418_v57 = vsub.f32 1.0, %v393_v56  ;;  %v420_v60 = vmul.f32 %v393_v56, %v687_v29 }
 0x15a   :  { %v403_v38 = vmul.f32 %v496_v31, %v402_v35 }
 0x15c   :  { %v404_v43 = vadd.f32 %v496_v31, %v403_v38 }
 0x15e   :  { %v408_v46 = vsel %vm407_vm2, %v496_v31, %v404_v43 }
 0x15f   :  { %v413_v47 = vsel %vm410_vm3, %v412_v45, %v408_v46 }
 0x160   :  { %v415_v50 = vmul.f32 %v413_v47, %v373_v42 }
 0x162   :  { %v416_v53 = vadd.f32 %v415_v50, %v257_v49 }
 0x164   :  { %497 = vtanh.f32 %v416_v53 }
 0x16a   :  { %v498_v58 = vpop.eup %497 }
 0x16b   :  { %v419_v59 = vmul.f32 %v498_v58, %v418_v57 }
 0x16d   :  { %v421_v61 = vadd.f32 %v420_v60, %v419_v59 }
 0x16f   :  { %422 = vst [vmem:[%s732_s11] sm:$0xff] %v421_v61  ;;  %459 = vmatmul.f32.vlgmr.msrb.gmra.mxu3 %v421_v61 }
 0x1f2   :  { %v460_v63 = vpop.f32.mrf.mxu3 }
 0x1f3   :  { %v461_v0 = vadd.f32 %v486_v62, %v460_v63 }
 0x1f5   :  { %463 = vst [vmem:[%s731_s10] sm:$0xff] %v461_v0 }
 0x1f6   :  { %472 = vsyncpa [#allocation3], 1 }
 0x1f7   :  { %473 = vsyncpa [#allocation5], 1 }
 0x1f8   :  { %474 = vsyncpa [#allocation8], 1 }

</bundles_post_ra>
